<compile_context>
chip_gen: v7x
topology: tpu7x:2x2x1
jax: 0.10.0
libtpu: 0.0.40
codegen_flags: <defaults>
</compile_context>

<pallas_src>
import functools
import math

import jax
import jax.numpy as jnp
from jax import lax
from jax.experimental import pallas as pl
from jax.experimental.pallas import tpu as pltpu

_LANE = 128
_SUBLANE = 8
_DEFAULT_BLOCK_ROWS = 4096          # 4096 x 128 f32 = 2 MiB per block

# SELU constants (match torch.nn.SELU)
_SELU_ALPHA = 1.6732632423543772848170429916717
_SELU_SCALE = 1.0507009873554804934193349852946
# PReLU init (torch default: single parameter, init=0.25)
# TODO(synk): nn.PReLU's weight is learnable; expose it as a kernel input if a
# trained parameter (rather than the init value) is needed.
_PRELU_W = 0.25
# LeakyReLU default negative slope
_LEAKY_SLOPE = 0.01

# Activations safe to evaluate directly in bf16 (no transcendentals involved).
_BF16_SAFE = ("ReLU", "LeakyReLU", "PReLU")


def _softplus(x):
    # torch.nn.Softplus default: beta=1, threshold=20
    return jnp.where(x > 20.0, x, jnp.log1p(jnp.exp(jnp.minimum(x, 20.0))))


def _erf(x):
    # Abramowitz & Stegun 7.1.26 (max abs err ~1.5e-7).  Avoids relying on a
    # native erf lowering; uses only exp (EUP) + VPU polynomial work.
    a1, a2, a3, a4, a5 = (0.254829592, -0.284496736, 1.421413741,
                          -1.453152027, 1.061405429)
    p = 0.3275911
    s = jnp.where(x >= 0.0, 1.0, -1.0)
    z = jnp.abs(x)
    t = 1.0 / (1.0 + p * z)
    poly = ((((a5 * t + a4) * t + a3) * t + a2) * t + a1) * t
    return s * (1.0 - poly * jnp.exp(-z * z))


def _apply_activation(x, activation):
    if activation == "Sigmoid":
        return jax.nn.sigmoid(x)
    elif activation == "Tanh":
        return jnp.tanh(x)
    elif activation == "ReLU":
        return jnp.maximum(x, 0.0)
    elif activation == "Softplus":
        return _softplus(x)
    elif activation == "LeakyReLU":
        return jnp.where(x >= 0.0, x, _LEAKY_SLOPE * x)
    elif activation == "PReLU":
        return jnp.where(x >= 0.0, x, _PRELU_W * x)
    elif activation == "ELU":
        return jnp.where(x > 0.0, x, jnp.expm1(jnp.minimum(x, 0.0)))
    elif activation == "SELU":
        return _SELU_SCALE * jnp.where(
            x > 0.0, x, _SELU_ALPHA * jnp.expm1(jnp.minimum(x, 0.0)))
    elif activation == "GELU":
        # exact (erf-based) GELU, matching torch.nn.GELU default
        return 0.5 * x * (1.0 + _erf(x * (1.0 / math.sqrt(2.0))))
    elif activation == "GELU_tanh":
        c = math.sqrt(2.0 / math.pi)
        return 0.5 * x * (1.0 + jnp.tanh(c * (x + 0.044715 * x * x * x)))
    elif activation == "Swish":
        return x * jax.nn.sigmoid(x)
    elif activation == "Mish":
        return x * jnp.tanh(_softplus(x))
    else:
        raise ValueError("The activation name is incorrect")


def _hash_u32(x):
    # "lowbias32" integer hash (Chris Wellons): cheap VPU int ops, good avalanche.
    x = x ^ (x >> 16)
    x = x * jnp.uint32(0x7FEB352D)
    x = x ^ (x >> 15)
    x = x * jnp.uint32(0x846CA68B)
    x = x ^ (x >> 16)
    return x


# Acklam's rational approximation of the standard normal inverse CDF
# (abs err ~1.15e-9).  Only one log + one sqrt + one divide per element.
_A = (-3.969683028665376e+01, 2.209460984245205e+02, -2.759285104469687e+02,
      1.383577518672690e+02, -3.066479806614716e+01, 2.506628277459239e+00)
_B = (-5.447609879822406e+01, 1.615858368580409e+02, -1.556989798598866e+02,
      6.680131188771972e+01, -1.328068155288572e+01)
_C = (-7.784894002430293e-03, -3.223964580411365e-01, -2.400758277161838e+00,
      -2.549732539343734e+00, 4.374664141464968e+00, 2.938163982698783e+00)
_D = (7.784695709041462e-03, 3.224671290700398e-01, 2.445134137142996e+00,
      3.754408661907416e+00)
_P_LOW = 0.02425


def _inv_normal_cdf(u):
    """u strictly in (0,1) -> approx Phi^{-1}(u)."""
    q = u - 0.5
    in_tail = jnp.abs(q) > (0.5 - _P_LOW)

    # Central region: rational in r = q^2 (signed via q).
    r = q * q
    num_c = (((((_A[0] * r + _A[1]) * r + _A[2]) * r + _A[3]) * r + _A[4]) * r
             + _A[5]) * q
    den_c = ((((_B[0] * r + _B[1]) * r + _B[2]) * r + _B[3]) * r + _B[4]) * r + 1.0

    # Tail region, exploiting symmetry: t = sqrt(-2 ln min(u, 1-u)).
    pmin = jnp.maximum(jnp.minimum(u, 1.0 - u), 1e-12)
    t = jnp.sqrt(-2.0 * jnp.log(pmin))
    num_t = ((((_C[0] * t + _C[1]) * t + _C[2]) * t + _C[3]) * t + _C[4]) * t + _C[5]
    den_t = (((_D[0] * t + _D[1]) * t + _D[2]) * t + _D[3]) * t + 1.0

    num = jnp.where(in_tail, num_t, num_c)
    den = jnp.where(in_tail, den_t, den_c)
    x = num / den
    # tail rational yields the (negative) lower-tail value; mirror for upper tail.
    return jnp.where(in_tail & (q > 0.0), -x, x)


def _noisy_act_kernel(seed_ref, x_ref, o_ref, *, activation, noise, mean, std,
                      block_rows, compute_f32):
    x = x_ref[...]
    if compute_f32:
        x = x.astype(jnp.float32)
    y = _apply_activation(x, activation)

    if noise in ("gaussian", "multiplicative"):
        # Counter-based RNG keyed on (seed, global element index): the noise
        # realization is independent of the tiling / block size choice.
        shape = x_ref.shape
        row = lax.broadcasted_iota(jnp.int32, shape, 0)
        lane = lax.broadcasted_iota(jnp.int32, shape, 1)
        idx = (pl.program_id(0) * block_rows + row) * _LANE + lane
        seed_u = seed_ref[0].astype(jnp.uint32)
        bits = _hash_u32(idx.astype(jnp.uint32) * jnp.uint32(0x9E3779B9) + seed_u)
        # Uniform strictly inside (0, 1) from the top 23 bits (never rounds to
        # 0.0 or 1.0 in f32, so log() below is always finite).
        u = ((bits >> 9).astype(jnp.float32) + 0.5) * (1.0 / 8388608.0)
        z = _inv_normal_cdf(u) * std + mean
        if noise == "gaussian":
            y = y + z
        else:  # multiplicative
            y = y * z

    o_ref[...] = y.astype(o_ref.dtype)


@functools.partial(
    jax.jit,
    static_argnames=("activation", "noise", "mean", "std", "training",
                     "block_rows"),
)
def noisy_activation(x, seed, *, activation="ReLU", noise="none", mean=0.0,
                     std=1.0, training=True, block_rows=_DEFAULT_BLOCK_ROWS):
    """Forward pass of NoisyActivation.

    x:    any-shape float array (e.g. NCHW).
    seed: int32 scalar driving the in-kernel noise RNG (only used when
          training and noise in {'gaussian', 'multiplicative'}).
    """
    orig_shape = x.shape
    orig_dtype = x.dtype
    n_elems = x.size

    # Any noise string other than 'gaussian'/'multiplicative' behaves as 'none'
    # (the PyTorch module has no defined output for other strings).
    use_noise = bool(training) and noise in ("gaussian", "multiplicative")

    # Flatten to a lane-dense (rows, 128) layout.  Pad only up to one (8, 128)
    # tile (<= 4 KiB) so the layout constraint holds; a no-op when n_elems is
    # already a multiple of 1024.
    tile_elems = _SUBLANE * _LANE
    padded = pl.cdiv(n_elems, tile_elems) * tile_elems
    x_flat = x.reshape(-1)
    if padded != n_elems:
        x_flat = jnp.pad(x_flat, (0, padded - n_elems))
    rows = padded // _LANE
    x2d = x_flat.reshape(rows, _LANE)

    # Large blocks amortize the ~0.35us/grid-step overhead; the cdiv grid +
    # Pallas boundary masking handle a ragged last block (no divisor shrinking).
    br = min(int(block_rows), rows)         # rows (and hence br) is a mult. of 8
    grid = (pl.cdiv(rows, br),)

    compute_f32 = not (orig_dtype == jnp.bfloat16
                       and activation in _BF16_SAFE
                       and not use_noise)

    seed_arr = jnp.asarray(seed, dtype=jnp.int32).reshape((1,))

    kernel = functools.partial(
        _noisy_act_kernel,
        activation=activation,
        noise=noise if use_noise else "none",
        mean=float(mean),
        std=float(std),
        block_rows=br,
        compute_f32=compute_f32,
    )

    out2d = pl.pallas_call(
        kernel,
        out_shape=jax.ShapeDtypeStruct((rows, _LANE), orig_dtype),
        grid_spec=pltpu.PrefetchScalarGridSpec(
            num_scalar_prefetch=1,
            grid=grid,
            in_specs=[pl.BlockSpec((br, _LANE), lambda i, seed: (i, 0))],
            out_specs=pl.BlockSpec((br, _LANE), lambda i, seed: (i, 0)),
        ),
        compiler_params=pltpu.CompilerParams(
            # Tiles are fully independent -> let v7x's 2 TCs split the grid.
            dimension_semantics=("parallel",)),
    )(seed_arr, x2d)

    out_flat = out2d.reshape(-1)
    if padded != n_elems:
        out_flat = out_flat[:n_elems]
    return out_flat.reshape(orig_shape)


if __name__ == "__main__":
    key = jax.random.PRNGKey(0)
    x = jax.random.normal(key, (2, 4, 16, 16), dtype=jnp.float32)

    # 1) noise='none': check against a pure-JAX reference (exact GELU).
    y_none = noisy_activation(x, 0, activation="GELU", noise="none",
                              training=True)
    jax.block_until_ready(y_none)
    ref = 0.5 * x * (1.0 + jax.lax.erf(x / jnp.sqrt(2.0)))
    assert jnp.allclose(y_none, ref, atol=1e-5), "activation mismatch"

    # 2) training-mode gaussian noise (in-kernel counter-based RNG).
    y_gauss = noisy_activation(x, 1234, activation="GELU", noise="gaussian",
                               mean=0.0, std=0.1, training=True)
    jax.block_until_ready(y_gauss)
    assert y_gauss.shape == x.shape and y_gauss.dtype == x.dtype
    noise_sample = (y_gauss - y_none).reshape(-1)
    assert bool(jnp.any(jnp.abs(noise_sample) > 1e-6)), "noise not applied"
    assert abs(float(jnp.mean(noise_sample))) < 0.015, "noise mean off"
    assert 0.07 < float(jnp.std(noise_sample)) < 0.13, "noise std off"

    # 3) training-mode multiplicative noise.
    y_mult = noisy_activation(x, 42, activation="ReLU", noise="multiplicative",
                              mean=1.0, std=0.5, training=True)
    jax.block_until_ready(y_mult)
    assert y_mult.shape == x.shape

    # 4) eval mode + ragged grid (rows=24, block_rows=16 -> masked last block).
    x3 = jax.random.normal(jax.random.PRNGKey(2), (3, 4, 16, 16),
                           dtype=jnp.float32)
    y3 = noisy_activation(x3, 0, activation="Tanh", noise="gaussian",
                          training=False, block_rows=16)
    jax.block_until_ready(y3)
    assert jnp.allclose(y3, jnp.tanh(x3), atol=1e-6), "eval-mode mismatch"

    # 5) size not divisible by 1024 (exercises the small pad path).
    x4 = jax.random.normal(jax.random.PRNGKey(1), (3, 5, 7, 11),
                           dtype=jnp.float32)
    y4 = noisy_activation(x4, 7, activation="SELU", noise="gaussian",
                          mean=0.0, std=0.05, training=True)
    jax.block_until_ready(y4)
    assert y4.shape == x4.shape

    print("KERNEL_OK")
</pallas_src>

<mosaic_0001>
module attributes {stable_mosaic.version = 11 : i64} {
  func.func @_noisy_act_kernel(%arg0: i32, %arg1: memref<1xi32, #tpu.memory_space<smem>>, %arg2: memref<16x128xf32, #tpu.memory_space<vmem>>, %arg3: memref<16x128xf32, #tpu.memory_space<vmem>>) attributes {dimension_semantics = [#tpu.dimension_semantics<parallel>], iteration_bounds = array<i64: 1>, scalar_prefetch = 1 : i64, scratch_operands = 0 : i64, tpu.core_type = #tpu.core_type<tc>, window_params = [{transform_indices = @transform_0, window_bounds = array<i64: 16, 128>}, {transform_indices = @transform_1, window_bounds = array<i64: 16, 128>}]} {
    %c0 = arith.constant 0 : index
    %c0_0 = arith.constant 0 : index
    %0 = vector.load %arg2[%c0, %c0_0] : memref<16x128xf32, #tpu.memory_space<vmem>>, vector<16x128xf32>
    %cst = arith.constant 5.000000e-01 : f32
    %1 = vector.broadcast %cst : f32 to vector<16x128xf32>
    %2 = arith.mulf %1, %0 : vector<16x128xf32>
    %cst_1 = arith.constant 0.707106769 : f32
    %3 = vector.broadcast %cst_1 : f32 to vector<16x128xf32>
    %4 = arith.mulf %0, %3 : vector<16x128xf32>
    %cst_2 = arith.constant 0.000000e+00 : f32
    %5 = vector.broadcast %cst_2 : f32 to vector<16x128xf32>
    %6 = arith.cmpf oge, %4, %5 : vector<16x128xf32>
    %cst_3 = arith.constant 1.000000e+00 : f32
    %cst_4 = arith.constant -1.000000e+00 : f32
    %7 = vector.broadcast %cst_3 : f32 to vector<16x128xf32>
    %8 = vector.broadcast %cst_4 : f32 to vector<16x128xf32>
    %9 = arith.select %6, %7, %8 : vector<16x128xi1>, vector<16x128xf32>
    %10 = math.absf %4 : vector<16x128xf32>
    %cst_5 = arith.constant 0.327591091 : f32
    %11 = vector.broadcast %cst_5 : f32 to vector<16x128xf32>
    %12 = arith.mulf %11, %10 : vector<16x128xf32>
    %cst_6 = arith.constant 1.000000e+00 : f32
    %13 = vector.broadcast %cst_6 : f32 to vector<16x128xf32>
    %14 = arith.addf %13, %12 : vector<16x128xf32>
    %cst_7 = arith.constant 1.000000e+00 : f32
    %15 = vector.broadcast %cst_7 : f32 to vector<16x128xf32>
    %16 = arith.divf %15, %14 : vector<16x128xf32>
    %cst_8 = arith.constant 1.06140542 : f32
    %17 = vector.broadcast %cst_8 : f32 to vector<16x128xf32>
    %18 = arith.mulf %17, %16 : vector<16x128xf32>
    %cst_9 = arith.constant -1.45315206 : f32
    %19 = vector.broadcast %cst_9 : f32 to vector<16x128xf32>
    %20 = arith.addf %18, %19 : vector<16x128xf32>
    %21 = arith.mulf %20, %16 : vector<16x128xf32>
    %cst_10 = arith.constant 1.42141378 : f32
    %22 = vector.broadcast %cst_10 : f32 to vector<16x128xf32>
    %23 = arith.addf %21, %22 : vector<16x128xf32>
    %24 = arith.mulf %23, %16 : vector<16x128xf32>
    %cst_11 = arith.constant -0.284496725 : f32
    %25 = vector.broadcast %cst_11 : f32 to vector<16x128xf32>
    %26 = arith.addf %24, %25 : vector<16x128xf32>
    %27 = arith.mulf %26, %16 : vector<16x128xf32>
    %cst_12 = arith.constant 0.254829586 : f32
    %28 = vector.broadcast %cst_12 : f32 to vector<16x128xf32>
    %29 = arith.addf %27, %28 : vector<16x128xf32>
    %30 = arith.mulf %29, %16 : vector<16x128xf32>
    %cst_13 = arith.constant 0.000000e+00 : f32
    %31 = vector.broadcast %cst_13 : f32 to vector<16x128xf32>
    %32 = arith.subf %31, %10 : vector<16x128xf32>
    %33 = arith.mulf %32, %10 : vector<16x128xf32>
    %34 = math.exp %33 : vector<16x128xf32>
    %35 = arith.mulf %30, %34 : vector<16x128xf32>
    %cst_14 = arith.constant 1.000000e+00 : f32
    %36 = vector.broadcast %cst_14 : f32 to vector<16x128xf32>
    %37 = arith.subf %36, %35 : vector<16x128xf32>
    %38 = arith.mulf %9, %37 : vector<16x128xf32>
    %cst_15 = arith.constant 1.000000e+00 : f32
    %39 = vector.broadcast %cst_15 : f32 to vector<16x128xf32>
    %40 = arith.addf %39, %38 : vector<16x128xf32>
    %41 = arith.mulf %2, %40 : vector<16x128xf32>
    %c0_16 = arith.constant 0 : index
    %c0_17 = arith.constant 0 : index
    %42 = vector.load %arg3[%c0_16, %c0_17] : memref<16x128xf32, #tpu.memory_space<vmem>>, vector<16x128xf32>
    tpu.vector_store %arg3[%c0_16, %c0_17], %41 {strides = array<i32>} : memref<16x128xf32, #tpu.memory_space<vmem>>, vector<16x128xf32>,
    return
  }
  func.func @transform_0(%arg0: i32, %arg1: memref<1xi32, #tpu.memory_space<smem>>) -> (i32, i32) {
    %c0_i32 = arith.constant 0 : i32
    %c0_i32_0 = arith.constant 0 : i32
    return %arg0, %c0_i32 : i32, i32
  }
  func.func @transform_1(%arg0: i32, %arg1: memref<1xi32, #tpu.memory_space<smem>>) -> (i32, i32) {
    %c0_i32 = arith.constant 0 : i32
    %c0_i32_0 = arith.constant 0 : i32
    return %arg0, %c0_i32 : i32, i32
  }
}

</mosaic_0001>

<bundles_post_ra>
// kernel: noisy_activation.1
= control target key start
LH: loop header
LB: loop body
LE: loop exit
PB: predicated region body
PF: predicated region fallthrough
CT: control target
= control target key end

     0   :  { %v81_v39 = vmov -1.0   ;;  %s109_s0 = inlined_call_operand.<no memory space> [shape: s32[1], index: 0, kind: input, shape index: {}]   ;;  %s110_s1 = inlined_call_operand.vmem [shape: f32[16,128], index: 1, kind: input, shape index: {}]   ;;  %s111_s2 = inlined_call_operand.vmem [shape: f32[16,128], index: 2, kind: output, shape index: {}]  }
   0x1   :  { %v10_v0 = vld [vmem:[%s110_s1] sm:$0xff]  ;;  %v11_v1 = vld [vmem:[%s110_s1 + $0x8] sm:$0xff] }
   0x2   :  { %v14_v2 = vmul.f32 0.70710677, %v10_v0  ;;  %v15_v3 = vmul.f32 0.70710677, %v11_v1  ;;  %v12_v45 = vmul.f32 0.5, %v10_v0  ;;  %v13_v47 = vmul.f32 0.5, %v11_v1 }
   0x4   :  { %v20_v4 = vand.u32 2147483647, %v14_v2  ;;  %v21_v5 = vand.u32 2147483647, %v15_v3  ;;  %vm16_vm0 = vcmp.ge.f32.partialorder %v14_v2, 0.0  ;;  %vm17_vm1 = vcmp.ge.f32.partialorder %v15_v3, 0.0 }
   0x5   :  { %v18_v40 = vsel %vm16_vm0, 1.0, %v81_v39  ;;  %v19_v43 = vsel %vm17_vm1, 1.0, %v81_v39 }
   0x6   :  { %v22_v6 = vmul.f32 0.3275911, %v20_v4  ;;  %v23_v7 = vmul.f32 0.3275911, %v21_v5  ;;  %v48_v10 = vsub.f32 0.0, %v20_v4  ;;  %v49_v11 = vsub.f32 0.0, %v21_v5 }
   0x8   :  { %v24_v8 = vadd.f32 1.0, %v22_v6  ;;  %v25_v9 = vadd.f32 1.0, %v23_v7  ;;  %v50_v12 = vmul.f32 %v48_v10, %v20_v4  ;;  %v51_v13 = vmul.f32 %v49_v11, %v21_v5 }
   0xa   :  { %73 = vrcp.f32 %v24_v8  ;;  %v52_v17 = vmul.f32 1.442695, %v50_v12  ;;  %v54_v20 = vmul.f32 1.442695, %v51_v13 }
   0xb   :  { %75 = vrcp.f32 %v25_v9 }
   0xc   :  { %77 = vpow2.f32 %v52_v17 }
   0xd   :  { %79 = vpow2.f32 %v54_v20 }
  0x14   :  { %v74_v14 = vpop.eup %73 }
  0x15   :  { %v76_v15 = vpop.eup %75  ;;  %v30_v16 = vmul.f32 1.0614054, %v74_v14 }
  0x16   :  { %v31_v18 = vmul.f32 1.0614054, %v76_v15  ;;  %v78_v33 = vpop.eup %77 }
  0x17   :  { %v32_v19 = vadd.f32 -1.4531521, %v30_v16  ;;  %v80_v35 = vpop.eup %79 }
  0x18   :  { %v33_v21 = vadd.f32 -1.4531521, %v31_v18 }
  0x19   :  { %v34_v22 = vmul.f32 %v74_v14, %v32_v19 }
  0x1a   :  { %v35_v23 = vmul.f32 %v76_v15, %v33_v21 }
  0x1b   :  { %v36_v24 = vadd.f32 1.4214138, %v34_v22 }
  0x1c   :  { %v37_v25 = vadd.f32 1.4214138, %v35_v23 }
  0x1d   :  { %v38_v26 = vmul.f32 %v74_v14, %v36_v24 }
  0x1e   :  { %v39_v27 = vmul.f32 %v76_v15, %v37_v25 }
  0x1f   :  { %v40_v28 = vadd.f32 -0.28449672, %v38_v26 }
  0x20   :  { %v41_v29 = vadd.f32 -0.28449672, %v39_v27 }
  0x21   :  { %v42_v30 = vmul.f32 %v74_v14, %v40_v28 }
  0x22   :  { %v43_v31 = vmul.f32 %v76_v15, %v41_v29 }
  0x23   :  { %v44_v32 = vadd.f32 0.2548296, %v42_v30 }
  0x24   :  { %v45_v34 = vadd.f32 0.2548296, %v43_v31 }
  0x25   :  { %v46_v36 = vmul.f32 %v74_v14, %v44_v32 }
  0x26   :  { %v47_v37 = vmul.f32 %v76_v15, %v45_v34 }
  0x27   :  { %v56_v38 = vmul.f32 %v78_v33, %v46_v36 }
  0x28   :  { %v57_v41 = vmul.f32 %v80_v35, %v47_v37 }
  0x29   :  { %v58_v42 = vsub.f32 1.0, %v56_v38 }
  0x2a   :  { %v59_v44 = vsub.f32 1.0, %v57_v41 }
  0x2b   :  { %v60_v46 = vmul.f32 %v58_v42, %v18_v40 }
  0x2c   :  { %v61_v48 = vmul.f32 %v59_v44, %v19_v43 }
  0x2d   :  { %v62_v49 = vadd.f32 1.0, %v60_v46 }
  0x2e   :  { %v63_v50 = vadd.f32 1.0, %v61_v48 }
  0x2f   :  { %v64_v51 = vmul.f32 %v62_v49, %v12_v45 }
  0x30   :  { %v65_v52 = vmul.f32 %v63_v50, %v13_v47 }
  0x31   :  { %66 = vst [vmem:[%s111_s2] sm:$0xff] %v64_v51 }
  0x32   :  { %67 = vst [vmem:[%s111_s2 + $0x8] sm:$0xff] %v65_v52 }

</bundles_post_ra>
